<compile_context>
chip_gen: v5e
topology: v5e:2x2
jax: 0.10.0
libtpu: 0.0.40
codegen_flags: <defaults>
</compile_context>

<pallas_src>
import functools

import jax
import jax.numpy as jnp
from jax.experimental import pallas as pl
from jax.experimental.pallas import tpu as pltpu

HIDDEN = 64
LANE = 128            # hidden width padded to the TPU lane width
NEG_FILL = -1e30      # bias fill for padded logit columns -> exp underflows to 0


def policy_net_kernel(x_ref, w1_ref, b1_ref, w2_ref, b2_ref, w3_ref, b3_ref,
                      out_ref, *, output_dim):
    # x arrives f32; cast to bf16 (MXU-native) in-kernel.  Accumulate in f32.
    x = x_ref[...].astype(jnp.bfloat16)

    # f1 + ReLU  (bias add / ReLU in f32, then carry the activation as bf16)
    h1 = jnp.dot(x, w1_ref[...], preferred_element_type=jnp.float32)
    h1 = jnp.maximum(h1 + b1_ref[...], 0.0).astype(jnp.bfloat16)

    # f2 + ReLU
    h2 = jnp.dot(h1, w2_ref[...], preferred_element_type=jnp.float32)
    h2 = jnp.maximum(h2 + b2_ref[...], 0.0).astype(jnp.bfloat16)

    # action head (padded columns carry a -1e30 bias -> exactly zero prob)
    logits = jnp.dot(h2, w3_ref[...], preferred_element_type=jnp.float32)
    logits = logits + b3_ref[...]

    # numerically stable softmax over the (padded) lane axis
    m = jnp.max(logits, axis=-1, keepdims=True)
    e = jnp.exp(logits - m)
    denom = jnp.sum(e, axis=-1, keepdims=True)
    probs = e * pl.reciprocal(denom, approx=False)   # exact: PPO-ratio safe

    # store only the real action columns (narrow output block)
    out_ref[...] = probs[:, :output_dim].astype(out_ref.dtype)


def prepare_params(params):
    """Pad hidden/output to 128 lanes; store weight matmul operands as bf16."""
    w1, b1, w2, b2, w3, b3 = params
    in_dim = w1.shape[0]

    def pad_to(a, rows, cols, fill=0.0):
        return jnp.pad(a, ((0, rows - a.shape[0]), (0, cols - a.shape[1])),
                       constant_values=fill)

    w1p = pad_to(w1, in_dim, LANE).astype(jnp.bfloat16)
    b1p = pad_to(b1, 1, LANE).astype(jnp.float32)
    w2p = pad_to(w2, LANE, LANE).astype(jnp.bfloat16)
    b2p = pad_to(b2, 1, LANE).astype(jnp.float32)
    w3p = pad_to(w3, LANE, LANE).astype(jnp.bfloat16)
    b3p = pad_to(b3.astype(jnp.float32), 1, LANE, fill=NEG_FILL)
    return (w1p, b1p, w2p, b2p, w3p, b3p)


def _round_up(x, m):
    return ((x + m - 1) // m) * m


def policy_net_forward(x, padded_params, output_dim, *,
                       block_batch=256, min_grid_steps=4):
    """x: [batch, input_dim] float32. Returns [batch, output_dim] f32 probs."""
    w1, b1, w2, b2, w3, b3 = padded_params
    batch, in_dim = x.shape

    # Batch tile: aim for >= min_grid_steps grid steps (enables the BlockSpec
    # double-buffer pipeline and an even 2-per-TC split on v7x), rounded up to
    # 16 rows (bf16 sublane packing), capped by block_batch (v5e live-range
    # pressure), and at least 16.
    tb = _round_up(max(1, pl.cdiv(batch, min_grid_steps)), 16)
    tb = max(16, min(block_batch, tb))
    grid = (pl.cdiv(batch, tb),)   # partial last block handled by Pallas masking

    const = lambda shape: pl.BlockSpec(shape, lambda i: (0,) * len(shape))

    kernel = functools.partial(policy_net_kernel, output_dim=output_dim)

    probs = pl.pallas_call(
        kernel,
        out_shape=jax.ShapeDtypeStruct((batch, output_dim), jnp.float32),
        grid=grid,
        in_specs=[
            pl.BlockSpec((tb, in_dim), lambda i: (i, 0)),   # streamed per tile
            const(w1.shape), const(b1.shape),               # VMEM-resident
            const(w2.shape), const(b2.shape),
            const(w3.shape), const(b3.shape),
        ],
        out_specs=pl.BlockSpec((tb, output_dim), lambda i: (i, 0)),
        compiler_params=pltpu.CompilerParams(
            dimension_semantics=("parallel",),          # megacore on v7x
            vmem_limit_bytes=32 * 1024 * 1024,
        ),
    )(x, w1, b1, w2, b2, w3, b3)

    return probs


def init_params(key, input_dim, output_dim, hidden=HIDDEN):
    """Deterministic synthetic init (PyTorch-Linear-like uniform bounds).
    Weights stored as (in_features, out_features); biases as (1, out)."""
    ks = jax.random.split(key, 6)

    def linear(kw, kb, fan_in, fan_out):
        bound = 1.0 / jnp.sqrt(fan_in)
        w = jax.random.uniform(kw, (fan_in, fan_out), jnp.float32, -bound, bound)
        b = jax.random.uniform(kb, (1, fan_out), jnp.float32, -bound, bound)
        return w, b

    w1, b1 = linear(ks[0], ks[1], input_dim, hidden)
    w2, b2 = linear(ks[2], ks[3], hidden, hidden)
    w3, b3 = linear(ks[4], ks[5], hidden, output_dim)
    return (w1, b1, w2, b2, w3, b3)


def reference_forward(x, params):
    """Pure-JAX reference mirroring the kernel's bf16-operand / f32-acc matmuls."""
    w1, b1, w2, b2, w3, b3 = params

    def mm(a, w):
        return jnp.dot(a.astype(jnp.bfloat16), w.astype(jnp.bfloat16),
                       preferred_element_type=jnp.float32)

    h1 = jax.nn.relu(mm(x, w1) + b1)
    h2 = jax.nn.relu(mm(h1.astype(jnp.bfloat16).astype(jnp.float32), w2) + b2)
    return jax.nn.softmax(
        mm(h2.astype(jnp.bfloat16).astype(jnp.float32), w3) + b3, axis=-1)


if __name__ == "__main__":
    key = jax.random.PRNGKey(0)
    k_x, k_p = jax.random.split(key)

    # CartPole-sized policy: small demo shapes.
    batch, input_dim, output_dim = 64, 4, 2
    x = jax.random.normal(k_x, (batch, input_dim), dtype=jnp.float32)
    params = init_params(k_p, input_dim, output_dim)
    padded_params = prepare_params(params)

    # With batch=64 and min_grid_steps=4 -> tb=16, grid=(4,): exercises the
    # batch-tile pipeline even at this small demo size.
    probs = policy_net_forward(x, padded_params, output_dim)
    probs = jax.block_until_ready(probs)

    ref = reference_forward(x, params)
    assert probs.shape == (batch, output_dim)
    assert jnp.allclose(probs, ref, atol=1e-2), float(jnp.max(jnp.abs(probs - ref)))
    assert jnp.allclose(jnp.sum(probs, axis=-1), 1.0, atol=1e-3)

    print("KERNEL_OK")
</pallas_src>

<mosaic_0001>
module attributes {stable_mosaic.version = 11 : i64} {
  func.func @policy_net_kernel(%arg0: i32, %arg1: memref<16x4xf32, #tpu.memory_space<vmem>>, %arg2: memref<4x128xbf16, #tpu.memory_space<vmem>>, %arg3: memref<1x128xf32, #tpu.memory_space<vmem>>, %arg4: memref<128x128xbf16, #tpu.memory_space<vmem>>, %arg5: memref<1x128xf32, #tpu.memory_space<vmem>>, %arg6: memref<128x128xbf16, #tpu.memory_space<vmem>>, %arg7: memref<1x128xf32, #tpu.memory_space<vmem>>, %arg8: memref<16x2xf32, #tpu.memory_space<vmem>>) attributes {dimension_semantics = [#tpu.dimension_semantics<parallel>], iteration_bounds = array<i64: 4>, scalar_prefetch = 0 : i64, scratch_operands = 0 : i64, tpu.core_type = #tpu.core_type<tc>, window_params = [{transform_indices = @transform_0, window_bounds = array<i64: 16, 4>}, {pipeline_mode = #tpu.pipeline_mode<synchronous>, transform_indices = @transform_1, window_bounds = array<i64: 4, 128>}, {pipeline_mode = #tpu.pipeline_mode<synchronous>, transform_indices = @transform_2, window_bounds = array<i64: 1, 128>}, {pipeline_mode = #tpu.pipeline_mode<synchronous>, transform_indices = @transform_3, window_bounds = array<i64: 128, 128>}, {pipeline_mode = #tpu.pipeline_mode<synchronous>, transform_indices = @transform_4, window_bounds = array<i64: 1, 128>}, {pipeline_mode = #tpu.pipeline_mode<synchronous>, transform_indices = @transform_5, window_bounds = array<i64: 128, 128>}, {pipeline_mode = #tpu.pipeline_mode<synchronous>, transform_indices = @transform_6, window_bounds = array<i64: 1, 128>}, {transform_indices = @transform_7, window_bounds = array<i64: 16, 2>}]} {
    %c0 = arith.constant 0 : index
    %c0_0 = arith.constant 0 : index
    %0 = vector.load %arg1[%c0, %c0_0] : memref<16x4xf32, #tpu.memory_space<vmem>>, vector<16x4xf32>
    %1 = arith.truncf %0 : vector<16x4xf32> to vector<16x4xbf16>
    %c0_1 = arith.constant 0 : index
    %c0_2 = arith.constant 0 : index
    %2 = vector.load %arg2[%c0_1, %c0_2] : memref<4x128xbf16, #tpu.memory_space<vmem>>, vector<4x128xbf16>
    %cst = arith.constant dense<0.000000e+00> : vector<16x128xf32>
    %3 = tpu.matmul %1, %2, %cst {dimension_numbers = #tpu.dot_dimension_numbers<[1], [0], [0], [1], [0, 0, 1, 1], [], []>} : vector<16x4xbf16>, vector<4x128xbf16>, vector<16x128xf32> -> vector<16x128xf32>
    %c0_3 = arith.constant 0 : index
    %c0_4 = arith.constant 0 : index
    %4 = vector.load %arg3[%c0_3, %c0_4] : memref<1x128xf32, #tpu.memory_space<vmem>>, vector<1x128xf32>
    %5 = vector.broadcast %4 : vector<1x128xf32> to vector<16x128xf32>
    %6 = arith.addf %3, %5 : vector<16x128xf32>
    %cst_5 = arith.constant 0.000000e+00 : f32
    %7 = vector.broadcast %cst_5 : f32 to vector<16x128xf32>
    %8 = arith.maximumf %6, %7 : vector<16x128xf32>
    %9 = arith.truncf %8 : vector<16x128xf32> to vector<16x128xbf16>
    %c0_6 = arith.constant 0 : index
    %c0_7 = arith.constant 0 : index
    %10 = vector.load %arg4[%c0_6, %c0_7] : memref<128x128xbf16, #tpu.memory_space<vmem>>, vector<128x128xbf16>
    %cst_8 = arith.constant dense<0.000000e+00> : vector<16x128xf32>
    %11 = tpu.matmul %9, %10, %cst_8 {dimension_numbers = #tpu.dot_dimension_numbers<[1], [0], [0], [1], [0, 0, 1, 1], [], []>} : vector<16x128xbf16>, vector<128x128xbf16>, vector<16x128xf32> -> vector<16x128xf32>
    %c0_9 = arith.constant 0 : index
    %c0_10 = arith.constant 0 : index
    %12 = vector.load %arg5[%c0_9, %c0_10] : memref<1x128xf32, #tpu.memory_space<vmem>>, vector<1x128xf32>
    %13 = vector.broadcast %12 : vector<1x128xf32> to vector<16x128xf32>
    %14 = arith.addf %11, %13 : vector<16x128xf32>
    %cst_11 = arith.constant 0.000000e+00 : f32
    %15 = vector.broadcast %cst_11 : f32 to vector<16x128xf32>
    %16 = arith.maximumf %14, %15 : vector<16x128xf32>
    %17 = arith.truncf %16 : vector<16x128xf32> to vector<16x128xbf16>
    %c0_12 = arith.constant 0 : index
    %c0_13 = arith.constant 0 : index
    %18 = vector.load %arg6[%c0_12, %c0_13] : memref<128x128xbf16, #tpu.memory_space<vmem>>, vector<128x128xbf16>
    %cst_14 = arith.constant dense<0.000000e+00> : vector<16x128xf32>
    %19 = tpu.matmul %17, %18, %cst_14 {dimension_numbers = #tpu.dot_dimension_numbers<[1], [0], [0], [1], [0, 0, 1, 1], [], []>} : vector<16x128xbf16>, vector<128x128xbf16>, vector<16x128xf32> -> vector<16x128xf32>
    %c0_15 = arith.constant 0 : index
    %c0_16 = arith.constant 0 : index
    %20 = vector.load %arg7[%c0_15, %c0_16] : memref<1x128xf32, #tpu.memory_space<vmem>>, vector<1x128xf32>
    %21 = vector.broadcast %20 : vector<1x128xf32> to vector<16x128xf32>
    %22 = arith.addf %19, %21 : vector<16x128xf32>
    %cst_17 = arith.constant dense<0xFF800000> : vector<16xf32>
    %23 = vector.multi_reduction <maximumf>, %22, %cst_17 [1] : vector<16x128xf32> to vector<16xf32>
    %24 = vector.shape_cast %23 : vector<16xf32> to vector<16x1xf32>
    %25 = vector.broadcast %24 : vector<16x1xf32> to vector<16x128xf32>
    %26 = arith.subf %22, %25 : vector<16x128xf32>
    %27 = math.exp %26 : vector<16x128xf32>
    %cst_18 = arith.constant dense<0.000000e+00> : vector<16xf32>
    %28 = vector.multi_reduction <add>, %27, %cst_18 [1] : vector<16x128xf32> to vector<16xf32>
    %29 = vector.shape_cast %28 : vector<16xf32> to vector<16x1xf32>
    %30 = tpu.reciprocal %29 : vector<16x1xf32> -> vector<16x1xf32>
    %31 = vector.broadcast %30 : vector<16x1xf32> to vector<16x128xf32>
    %32 = arith.mulf %27, %31 : vector<16x128xf32>
    %33 = vector.extract_strided_slice %32 {offsets = [0, 0], sizes = [16, 2], strides = [1, 1]} : vector<16x128xf32> to vector<16x2xf32>
    %c0_19 = arith.constant 0 : index
    %c0_20 = arith.constant 0 : index
    %34 = vector.load %arg8[%c0_19, %c0_20] : memref<16x2xf32, #tpu.memory_space<vmem>>, vector<16x2xf32>
    tpu.vector_store %arg8[%c0_19, %c0_20], %33 {strides = array<i32>} : memref<16x2xf32, #tpu.memory_space<vmem>>, vector<16x2xf32>,
    return
  }
  func.func @transform_0(%arg0: i32) -> (i32, i32) {
    %c0_i32 = arith.constant 0 : i32
    %c0_i32_0 = arith.constant 0 : i32
    return %arg0, %c0_i32 : i32, i32
  }
  func.func @transform_1(%arg0: i32) -> (i32, i32) {
    %c0_i32 = arith.constant 0 : i32
    %c0_i32_0 = arith.constant 0 : i32
    %c0_i32_1 = arith.constant 0 : i32
    return %c0_i32, %c0_i32_0 : i32, i32
  }
  func.func @transform_2(%arg0: i32) -> (i32, i32) {
    %c0_i32 = arith.constant 0 : i32
    %c0_i32_0 = arith.constant 0 : i32
    %c0_i32_1 = arith.constant 0 : i32
    return %c0_i32, %c0_i32_0 : i32, i32
  }
  func.func @transform_3(%arg0: i32) -> (i32, i32) {
    %c0_i32 = arith.constant 0 : i32
    %c0_i32_0 = arith.constant 0 : i32
    %c0_i32_1 = arith.constant 0 : i32
    return %c0_i32, %c0_i32_0 : i32, i32
  }
  func.func @transform_4(%arg0: i32) -> (i32, i32) {
    %c0_i32 = arith.constant 0 : i32
    %c0_i32_0 = arith.constant 0 : i32
    %c0_i32_1 = arith.constant 0 : i32
    return %c0_i32, %c0_i32_0 : i32, i32
  }
  func.func @transform_5(%arg0: i32) -> (i32, i32) {
    %c0_i32 = arith.constant 0 : i32
    %c0_i32_0 = arith.constant 0 : i32
    %c0_i32_1 = arith.constant 0 : i32
    return %c0_i32, %c0_i32_0 : i32, i32
  }
  func.func @transform_6(%arg0: i32) -> (i32, i32) {
    %c0_i32 = arith.constant 0 : i32
    %c0_i32_0 = arith.constant 0 : i32
    %c0_i32_1 = arith.constant 0 : i32
    return %c0_i32, %c0_i32_0 : i32, i32
  }
  func.func @transform_7(%arg0: i32) -> (i32, i32) {
    %c0_i32 = arith.constant 0 : i32
    %c0_i32_0 = arith.constant 0 : i32
    return %arg0, %c0_i32 : i32, i32
  }
}

</mosaic_0001>

<bundles_post_ra>
// kernel: tpu_custom_call.1
= control target key start
LH: loop header
LB: loop body
LE: loop exit
PB: predicated region body
PF: predicated region fallthrough
CT: control target
= control target key end

     0   :  { %12 = vsyncpa [#allocation3], 0  ;;  %s826_s24 = smov 0   ;;  %s891_s0 = inlined_call_operand.vmem [shape: f32[64,4], index: 0, kind: input, shape index: {}]   ;;  %s892_s1 = inlined_call_operand.vmem [shape: bf16[4,128], index: 1, kind: input, shape index: {}]   ;;  %s893_s2 = inlined_call_operand.vmem [shape: f32[1,128], index: 2, kind: input, shape index: {}]   ;;  %s894_s3 = inlined_call_operand.vmem [shape: bf16[128,128], index: 3, kind: input, shape index: {}]   ;;  %s895_s4 = inlined_call_operand.vmem [shape: f32[1,128], index: 4, kind: input, shape index: {}]   ;;  %s896_s5 = inlined_call_operand.hbm [shape: bf16[128,128], index: 5, kind: input, shape index: {}]   ;;  %s897_s6 = inlined_call_operand.vmem [shape: f32[1,128], index: 6, kind: input, shape index: {}]   ;;  %s898_s7 = inlined_call_operand.vmem [shape: f32[64,2], index: 7, kind: output, shape index: {}]  }
   0x1 LB: > { %s224_s27 = sshll.u32 %s896_s5, 4  ;;  %s615_s28 = sadd.s32 4294967295, %s781_s24   ;;  %s781_s24 = sphi %s826_s24, %s18_s24   ;;  %s225_s27 = int_to_ptr.hbm [resolvable:$true] %s224_s27 }
   0x2   : > { %p617_p0 = scmp.ge.s32.totalorder %s781_s24, 1  ;;  %p201_p1 = scmp.lt.s32.totalorder %s781_s24, 5 }
   0x3   : > { %p717_p2 = scmp.eq.s32.totalorder %s615_s28, 0  ;;  %s783_s29 = smov [#allocation2]  }
   0x4   : > { %p202_p3 = pnand %p617_p0, %p201_p1  ;;  %s226_s30 = sshll.u32 %s783_s29, 4  ;;  %s227_s30 = int_to_ptr.vmem [resolvable:$true] %s226_s30 }
   0x5   : > { %s784_s8 = smov 64   ;;  %s785_s9 = smov 4  }
   0x6   : > { %p713_p4 = pneg %p202_p3  ;;  %254 = sbr.rel (%p202_p3) target bundleno = 706 (0x2c2), region = 48 }
   0x8   : > { %p714_p5 = pnand %p717_p2, %p713_p4 }
   0xa   : > { %716 = dma.hbm_to_vmem [thread:$0]  (!%p714_p5), %s225_s27, 1024, %s227_s30, [#allocation3], %s784_s8, %s784_s8, %s785_s9  }
   0xb   : > { %776 = dma.done.wait (%p717_p2), [#allocation3], 1024  }
   0xc   : > { %778 = vsyncadd (%p717_p2), [#allocation3], 4294966272  ;;  %s622_s10 = sshll.u32 %s615_s28, 1  ;;  %vm312_vm0 = vcmask 1041408   ;;  %v303_v0 = vld [vmem:[%s892_s1] sm:$0x3] }
   0xd   : > { %p288_p6 = scmp.lt.s32.totalorder %s622_s10, 7  ;;  %v314_v3 = vsel %vm312_vm0, %v303_v0, 0  ;;  %v700_v5 = vld [vmem:[%s894_s3 + $0x38] sm:$0xff]  ;;  %vm308_vm1 = vcmask 31744   ;;  %v699_v6 = vld [vmem:[%s894_s3 + $0x30] sm:$0xff]  ;;  %v698_v7 = vld [vmem:[%s894_s3 + $0x28] sm:$0xff] }
   0xe   : > { %323 = vmatpush.bf16.msra.mxu0 %v314_v3  ;;  %401 = vmatpush.bf16.msra.mxu1 %v700_v5  ;;  %v697_v8 = vld [vmem:[%s894_s3 + $0x20] sm:$0xff]  ;;  %v696_v9 = vld [vmem:[%s894_s3 + $0x18] sm:$0xff]  ;;  %v695_v10 = vld [vmem:[%s894_s3 + $0x10] sm:$0xff]  ;;  %vm544_vm6 = vcmask 15360  }
   0xf   : > { %s900_s10 = smov (!%p288_p6, %s622_s10), 7  ;;  %v694_v11 = vld [vmem:[%s894_s3 + $0x8] sm:$0xff]  ;;  %v693_v12 = vld [vmem:[%s894_s3] sm:$0xff]  ;;  %v708_v13 = vld [vmem:[#allocation2 + $0x38] sm:$0xff] }
  0x10   : > { %s623_s11 = sshll.u32 %s900_s10, 3  ;;  %486 = vmatpush.bf16.msra.mxu2 %v708_v13  ;;  %v707_v14 = vld [vmem:[#allocation2 + $0x30] sm:$0xff]  ;;  %v706_v15 = vld [vmem:[#allocation2 + $0x28] sm:$0xff]  ;;  %v705_v16 = vld [vmem:[#allocation2 + $0x20] sm:$0xff] }
  0x11   : > { %s291_s14 = scalar_lea.vmem %s891_s0, %s623_s11  ;;  %v730_v18 = vld [vmem:[%s893_s2] ss:$0 sm:$0xff]  ;;  %v704_v25 = vld [vmem:[#allocation2 + $0x18] sm:$0xff]  ;;  %v703_v26 = vld [vmem:[#allocation2 + $0x10] sm:$0xff]  ;;  %s297_s21 = scalar_lea.vmem %s898_s7, %s623_s11 }
  0x12   : > { %v300_v1 = vld [vmem:[%s291_s14] sm:$0xff]  ;;  %v301_v2 = vld [vmem:[%s291_s14 + $0x8] sm:$0xff]  ;;  %402 = vmatpush.bf16.msra.mxu1 %v699_v6 }
  0x13   : > { %v302_v4 = vpack.c.bf16 %v301_v2, %v300_v1  ;;  %v702_v27 = vld [vmem:[#allocation2 + $0x8] sm:$0xff]  ;;  %v701_v28 = vld [vmem:[#allocation2] sm:$0xff] }
  0x14   : > { %487 = vmatpush.bf16.msra.mxu2 %v707_v14  ;;  %v731_v30 = vld [vmem:[%s895_s4] ss:$0 sm:$0xff] }
  0x15   : > { %626 = vmatmul.msk.bf16.vlgmr.msra.gmra.mxu0 %vm308_vm1, %v302_v4  ;;  %v732_v37 = vld [vmem:[%s897_s6] ss:$0 sm:$0xff] }
  0x16   : > { %403 = vmatpush.bf16.msra.mxu1 %v698_v7 }
  0x18   : > { %488 = vmatpush.bf16.msra.mxu2 %v706_v15 }
  0x1a   : > { %404 = vmatpush.bf16.msra.mxu1 %v697_v8 }
  0x1c   : > { %489 = vmatpush.bf16.msra.mxu2 %v705_v16 }
  0x1e   : > { %405 = vmatpush.bf16.msra.mxu1 %v696_v9 }
  0x20   : > { %490 = vmatpush.bf16.msra.mxu2 %v704_v25 }
  0x22   : > { %406 = vmatpush.bf16.msra.mxu1 %v695_v10 }
  0x24   : > { %491 = vmatpush.bf16.msra.mxu2 %v703_v26 }
  0x26   : > { %407 = vmatpush.bf16.msra.mxu1 %v694_v11 }
  0x28   : > { %492 = vmatpush.bf16.msra.mxu2 %v702_v27 }
  0x2a   : > { %408 = vmatpush.bf16.msra.mxu1 %v693_v12 }
  0x2c   : > { %493 = vmatpush.bf16.msra.mxu2 %v701_v28 }
  0x92   : > { %v325_v17 = vpop.f32.mrf.mxu0 }
  0x93   : > { %v326_v19 = vadd.f32 %v730_v18, %v325_v17 }
  0x95   : > { %v330_v22 = vmax.f32 %v326_v19, 0.0 }
  0x9a   : > { %v327_v20 = vpop.f32.mrf.mxu0 }
  0x9b   : > { %v328_v21 = vadd.f32 %v730_v18, %v327_v20 }
  0x9d   : > { %v331_v23 = vmax.f32 %v328_v21, 0.0 }
  0x9f   : > { %v332_v24 = vpack.c.bf16 %v331_v23, %v330_v22 }
  0xa1   : > { %409 = vmatmul.bf16.vlgmr.msra.gmra.mxu1 %v332_v24 }
 0x11e   : > { %v410_v29 = vpop.f32.mrf.mxu1 }
 0x11f   : > { %v411_v31 = vadd.f32 %v731_v30, %v410_v29 }
 0x121   : > { %v415_v34 = vmax.f32 %v411_v31, 0.0 }
 0x126   : > { %v412_v32 = vpop.f32.mrf.mxu1 }
 0x127   : > { %v413_v33 = vadd.f32 %v731_v30, %v412_v32 }
 0x129   : > { %v416_v35 = vmax.f32 %v413_v33, 0.0 }
 0x12b   : > { %v417_v36 = vpack.c.bf16 %v416_v35, %v415_v34 }
 0x12d   : > { %494 = vmatmul.bf16.vlgmr.msra.gmra.mxu2 %v417_v36 }
 0x1b0   : > { %v495_v38 = vpop.f32.mrf.mxu2 }
 0x1b1   : > { %v496_v39 = vadd.f32 %v732_v37, %v495_v38 }
 0x1b3   : > { %500 = vmax.xlane.f32.xlu0 %v496_v39 }
 0x1b8   : > { %v497_v40 = vpop.f32.mrf.mxu2 }
 0x1b9   : > { %v498_v41 = vadd.f32 %v732_v37, %v497_v40 }
 0x1bb   : > { %502 = vmax.xlane.f32.xlu0 %v498_v41 }
 0x226   : > { %v501_v42 = vpop.xlane.xlu0 %500 }
 0x227   : > { %v504_v43 = vsub.f32 %v496_v39, %v501_v42 }
 0x229   : > { %v506_v44 = vmul.f32 1.442695, %v504_v43 }
 0x22b   : > { %733 = vpow2.f32 %v506_v44 }
 0x22e   : > { %v503_v45 = vpop.xlane.xlu0 %502 }
 0x22f   : > { %v505_v46 = vsub.f32 %v498_v41, %v503_v45 }
 0x231   : > { %v734_v47 = vpop.eup %733  ;;  %v508_v48 = vmul.f32 1.442695, %v505_v46 }
 0x232   : > { %510 = vadd.xlane.f32.xlu1 %v734_v47 }
 0x233   : > { %735 = vpow2.f32 %v508_v48 }
 0x239   : > { %v736_v49 = vpop.eup %735 }
 0x23a   : > { %512 = vadd.xlane.f32.xlu1 %v736_v49 }
 0x2a5   : > { %v511_v50 = vpop.xlane.xlu1 %510 }
 0x2a6   : > { %737 = vrcp.f32 %v511_v50  ;;  %v525_v55 = vand.u32 2147483648, %v511_v50  ;;  %v523_v57 = vand.u32 2147483647, %v511_v50  ;;  %vm519_vm3 = vweird.f32 %v511_v50 }
 0x2a8   : > { %v526_v60 = vor.u32 1.1754944e-38, %v525_v55  ;;  %vm524_vm5 = vcmp.eq.f32.partialorder %v523_v57, 8.507059e+37 }
 0x2ac   : > { %v738_v51 = vpop.eup %737 }
 0x2ad   : > { %v515_v52 = vmul.f32 %v738_v51, %v511_v50  ;;  %v513_v53 = vpop.xlane.xlu1 %512  ;;  %vm520_vm2 = vweird.f32 %v738_v51 }
 0x2ae   : > { %739 = vrcp.f32 %v513_v53  ;;  %vm521_vm4 = vmor %vm519_vm3, %vm520_vm2  ;;  %v539_v2 = vand.u32 2147483648, %v513_v53  ;;  %v537_v4 = vand.u32 2147483647, %v513_v53  ;;  %vm533_vm8 = vweird.f32 %v513_v53 }
 0x2af   : > { %v516_v54 = vsub.f32 1.0, %v515_v52 }
 0x2b0   : > { %v540_v6 = vor.u32 1.1754944e-38, %v539_v2  ;;  %vm538_vm10 = vcmp.eq.f32.partialorder %v537_v4, 8.507059e+37 }
 0x2b1   : > { %v517_v56 = vmul.f32 %v738_v51, %v516_v54 }
 0x2b3   : > { %v518_v58 = vadd.f32 %v738_v51, %v517_v56 }
 0x2b4   : > { %v740_v59 = vpop.eup %739 }
 0x2b5   : > { %v522_v61 = vsel %vm521_vm4, %v738_v51, %v518_v58  ;;  %v529_v62 = vmul.f32 %v740_v59, %v513_v53  ;;  %vm534_vm7 = vweird.f32 %v740_v59 }
 0x2b6   : > { %v527_v63 = vsel %vm524_vm5, %v526_v60, %v522_v61  ;;  %vm535_vm9 = vmor %vm533_vm8, %vm534_vm7 }
 0x2b7   : > { %v542_v0 = vmul.f32 %v734_v47, %v527_v63  ;;  %v530_v1 = vsub.f32 1.0, %v529_v62 }
 0x2b9   : > { %545 = vst.msk [vmem:[%s297_s21] sm:$0xff] %vm544_vm6, %v542_v0  ;;  %v531_v3 = vmul.f32 %v740_v59, %v530_v1 }
 0x2bb   : > { %v532_v5 = vadd.f32 %v740_v59, %v531_v3 }
 0x2bd   : > { %v536_v7 = vsel %vm535_vm9, %v740_v59, %v532_v5 }
 0x2be   : > { %v541_v8 = vsel %vm538_vm10, %v540_v6, %v536_v7 }
 0x2bf   : > { %v543_v9 = vmul.f32 %v736_v49, %v541_v8 }
 0x2c1   : > { %546 = vst.msk [vmem:[%s297_s21 + $0x8] sm:$0xff] %vm544_vm6, %v543_v9 }
 0x2c2 PF: > { %s18_s24 = sadd.s32 1, %s781_s24  }
 0x2c3   : > { %p15_p7 = scmp.ge.s32.totalorder %s18_s24, 6  }
 0x2c5   :  { %17 = sbr.rel (!%p15_p7) target bundleno = 1 (0x1), region = 83 }
 0x2ca   :  { %569 = vsyncpa [#allocation3], 1 }
 0x2cb   :  { %571 = vsyncpa [#allocation3 + $0x1], 1 }

</bundles_post_ra>
